<compile_context>
chip_gen: v7x
topology: tpu7x:2x2x1
jax: 0.10.0
libtpu: 0.0.40
codegen_flags: <defaults>
</compile_context>

<pallas_src>
import jax
import jax.numpy as jnp
from jax.experimental import pallas as pl
from jax.experimental.pallas import tpu as pltpu


def _temporal_attention_kernel(x_ref, w_ref, o_ref):
    # x_ref: (BB, T, H) VMEM block; w_ref: (1, H) f32 weight row (resident across grid).
    x = x_ref[...]                                   # native dtype (f32 / bf16)
    w = w_ref[...]                                   # (1, H) f32

    # Score + softmax path in f32 (tiny compared to the HBM-bound reweight below).
    # scores[b, t] = sum_h x[b, t, h] * w[h]   (nn.Linear bias cancels in softmax)
    scores = jnp.sum(x.astype(jnp.float32) * w, axis=-1)       # (BB, T), T on lanes
    m = jnp.max(scores, axis=-1, keepdims=True)                # (BB, 1) lane reduce
    e = jnp.exp(scores - m)                                    # (BB, T)
    denom = jnp.sum(e, axis=-1, keepdims=True)                 # (BB, 1)
    # Exact reciprocal keeps 1e-5 fidelity; kernel is HBM-bound so the EUP approx
    # path would not change wall-clock anyway.
    weights = e * pl.reciprocal(denom, approx=False)           # (BB, T)

    # Reweight in the input's native dtype (no full-tile f32 temporary for bf16;
    # exact no-op for f32 inputs) and store.
    o_ref[...] = (x * weights[..., None].astype(x.dtype)).astype(o_ref.dtype)


def _tpu_budgets():
    """Generation-aware (physical VMEM, vmem limit, per-tile budget, min grid len)."""
    try:
        vmem_cap = int(pltpu.get_tpu_info().vmem_capacity_bytes)
    except Exception:
        vmem_cap = 64 * 1024 * 1024          # conservative: assume v7x-sized VMEM
    # ~25% headroom below physical VMEM for compiler-internal scratch:
    #   v7x (64 MiB) -> 48 MiB limit; v5e/v6e (128 MiB) -> 96 MiB limit.
    vmem_limit = (vmem_cap * 3) // 4
    # 2x-in + 2x-out double buffers + ~2 tile-sized f32 score-path temporaries
    # must fit under the limit -> ~limit/8 per tile (6 MiB v7x, 12 MiB v5e/v6e).
    tile_budget = vmem_limit // 8

    # v7x and v4/v5p megacore expose 2 TensorCores behind one device; a "parallel"
    # grid axis shards across them, so keep at least 2 grid steps there.
    try:
        kind = jax.devices()[0].device_kind.lower()
    except Exception:
        kind = ""
    if kind == "":
        min_grid = 2                          # unknown: halving a block is cheap,
    else:                                     # idling a TensorCore is not.
        min_grid = 2 if any(t in kind for t in ("v4", "v5p", "7")) else 1
    return vmem_cap, vmem_limit, tile_budget, min_grid


def _auto_block_b(batch, bytes_per_batch, tile_budget, min_grid):
    """Largest batch block that fits the tile budget, keeping >= min_grid grid steps."""
    block_b = max(1, min(batch, tile_budget // max(1, bytes_per_batch)))
    if min_grid > 1 and batch >= min_grid:
        block_b = min(block_b, -(-batch // min_grid))   # ceil(batch / min_grid)
    return int(block_b)


def temporal_attention(x, w, b=None, *, block_b=None, tile_budget_bytes=None,
                       vmem_limit_bytes=None):
    """x: (B, T, H); w: (H, 1) (transposed nn.Linear weight); b unused (cancels in
    softmax, accepted for API fidelity). Returns (B, T, H)."""
    B, T, H = x.shape
    itemsize = x.dtype.itemsize
    w_row = jnp.asarray(w, dtype=jnp.float32).reshape(1, H)   # lane-dense weight row

    vmem_cap_auto, vmem_limit_auto, tile_budget_auto, min_grid = _tpu_budgets()
    if tile_budget_bytes is None:
        tile_budget_bytes = tile_budget_auto

    bytes_per_batch = T * H * itemsize
    if block_b is None:
        block_b = _auto_block_b(B, bytes_per_batch, tile_budget_bytes, min_grid)
    block_b = max(1, min(int(block_b), B))
    # Ragged last block is padded/masked by Pallas -> no silent truncation for
    # non-divisible B or caller-supplied block_b.
    grid = (pl.cdiv(B, block_b),)

    if vmem_limit_bytes is None:
        vmem_limit_bytes = vmem_limit_auto
        # Best-effort bump if a single block is unexpectedly large (e.g. huge T*H
        # with block_b == 1); capped at physical VMEM. See T-tiling TODO above.
        tile_bytes = block_b * T * H * itemsize
        needed = 4 * tile_bytes + 2 * block_b * T * H * 4 + (1 << 20)
        vmem_limit_bytes = min(vmem_cap_auto, max(vmem_limit_bytes, needed))

    cost = pl.CostEstimate(
        flops=3 * B * T * H,                    # score reduce + reweight
        transcendentals=B * T,                  # exp
        bytes_accessed=2 * B * T * H * itemsize + H * 4,
    )

    return pl.pallas_call(
        _temporal_attention_kernel,
        out_shape=jax.ShapeDtypeStruct((B, T, H), x.dtype),
        grid_spec=pltpu.PrefetchScalarGridSpec(
            num_scalar_prefetch=0,
            grid=grid,
            in_specs=[
                pl.BlockSpec((block_b, T, H), lambda i: (i, 0, 0)),
                pl.BlockSpec((1, H), lambda i: (0, 0)),
            ],
            out_specs=pl.BlockSpec((block_b, T, H), lambda i: (i, 0, 0)),
        ),
        compiler_params=pltpu.CompilerParams(
            dimension_semantics=("parallel",),
            vmem_limit_bytes=int(vmem_limit_bytes),
        ),
        cost_estimate=cost,
    )(x, w_row)


def temporal_attention_ref(x, w, b):
    scores = jnp.einsum("bth,ho->bto", x, w) + b        # (B, T, 1)
    weights = jax.nn.softmax(scores, axis=1)
    return x * weights


if __name__ == "__main__":
    key = jax.random.PRNGKey(0)
    B, T, H = 2, 8, 32  # batch, seq/time, hidden_dim

    kx, kw, kb = jax.random.split(key, 3)
    x = jax.random.normal(kx, (B, T, H), dtype=jnp.float32)
    # nn.Linear(hidden_dim, 1): weight (1, H), bias (1,). Kernel takes transposed (H, 1).
    w = jax.random.normal(kw, (H, 1), dtype=jnp.float32) * (1.0 / jnp.sqrt(H))
    b = jax.random.normal(kb, (1,), dtype=jnp.float32) * 0.1

    out = jax.block_until_ready(temporal_attention(x, w, b))
    ref = temporal_attention_ref(x, w, b)

    assert out.shape == (B, T, H)
    assert jnp.allclose(out, ref, atol=1e-5, rtol=1e-5), "mismatch vs reference"
    print("KERNEL_OK")
</pallas_src>

<mosaic_0001>
module attributes {stable_mosaic.version = 11 : i64} {
  func.func @_temporal_attention_kernel(%arg0: i32, %arg1: memref<2x8x32xf32, #tpu.memory_space<vmem>>, %arg2: memref<1x32xf32, #tpu.memory_space<vmem>>, %arg3: memref<2x8x32xf32, #tpu.memory_space<vmem>>) attributes {dimension_semantics = [#tpu.dimension_semantics<parallel>], iteration_bounds = array<i64: 1>, scalar_prefetch = 0 : i64, scratch_operands = 0 : i64, tpu.core_type = #tpu.core_type<tc>, window_params = [{transform_indices = @transform_0, window_bounds = array<i64: 2, 8, 32>}, {pipeline_mode = #tpu.pipeline_mode<synchronous>, transform_indices = @transform_1, window_bounds = array<i64: 1, 32>}, {transform_indices = @transform_2, window_bounds = array<i64: 2, 8, 32>}]} {
    %c0 = arith.constant 0 : index
    %c0_0 = arith.constant 0 : index
    %c0_1 = arith.constant 0 : index
    %0 = vector.load %arg1[%c0, %c0_0, %c0_1] : memref<2x8x32xf32, #tpu.memory_space<vmem>>, vector<2x8x32xf32>
    %c0_2 = arith.constant 0 : index
    %c0_3 = arith.constant 0 : index
    %1 = vector.load %arg2[%c0_2, %c0_3] : memref<1x32xf32, #tpu.memory_space<vmem>>, vector<1x32xf32>
    %2 = vector.shape_cast %1 : vector<1x32xf32> to vector<1x1x32xf32>
    %3 = vector.broadcast %2 : vector<1x1x32xf32> to vector<2x8x32xf32>
    %4 = arith.mulf %0, %3 : vector<2x8x32xf32>
    %cst = arith.constant dense<0.000000e+00> : vector<2x8xf32>
    %5 = vector.multi_reduction <add>, %4, %cst [2] : vector<2x8x32xf32> to vector<2x8xf32>
    %cst_4 = arith.constant dense<0xFF800000> : vector<2xf32>
    %6 = vector.multi_reduction <maximumf>, %5, %cst_4 [1] : vector<2x8xf32> to vector<2xf32>
    %7 = vector.shape_cast %6 : vector<2xf32> to vector<2x1xf32>
    %8 = vector.broadcast %7 : vector<2x1xf32> to vector<2x8xf32>
    %9 = arith.subf %5, %8 : vector<2x8xf32>
    %10 = math.exp %9 : vector<2x8xf32>
    %cst_5 = arith.constant dense<0.000000e+00> : vector<2xf32>
    %11 = vector.multi_reduction <add>, %10, %cst_5 [1] : vector<2x8xf32> to vector<2xf32>
    %12 = vector.shape_cast %11 : vector<2xf32> to vector<2x1xf32>
    %13 = tpu.reciprocal %12 : vector<2x1xf32> -> vector<2x1xf32>
    %14 = vector.broadcast %13 : vector<2x1xf32> to vector<2x8xf32>
    %15 = arith.mulf %10, %14 : vector<2x8xf32>
    %16 = vector.shape_cast %15 : vector<2x8xf32> to vector<2x8x1xf32>
    %17 = vector.broadcast %16 : vector<2x8x1xf32> to vector<2x8x32xf32>
    %18 = arith.mulf %0, %17 : vector<2x8x32xf32>
    %c0_6 = arith.constant 0 : index
    %c0_7 = arith.constant 0 : index
    %c0_8 = arith.constant 0 : index
    %19 = vector.load %arg3[%c0_6, %c0_7, %c0_8] : memref<2x8x32xf32, #tpu.memory_space<vmem>>, vector<2x8x32xf32>
    tpu.vector_store %arg3[%c0_6, %c0_7, %c0_8], %18 {strides = array<i32>} : memref<2x8x32xf32, #tpu.memory_space<vmem>>, vector<2x8x32xf32>,
    return
  }
  func.func @transform_0(%arg0: i32) -> (i32, i32, i32) {
    %c0_i32 = arith.constant 0 : i32
    %c0_i32_0 = arith.constant 0 : i32
    %c0_i32_1 = arith.constant 0 : i32
    return %arg0, %c0_i32, %c0_i32_0 : i32, i32, i32
  }
  func.func @transform_1(%arg0: i32) -> (i32, i32) {
    %c0_i32 = arith.constant 0 : i32
    %c0_i32_0 = arith.constant 0 : i32
    %c0_i32_1 = arith.constant 0 : i32
    return %c0_i32, %c0_i32_0 : i32, i32
  }
  func.func @transform_2(%arg0: i32) -> (i32, i32, i32) {
    %c0_i32 = arith.constant 0 : i32
    %c0_i32_0 = arith.constant 0 : i32
    %c0_i32_1 = arith.constant 0 : i32
    return %arg0, %c0_i32, %c0_i32_0 : i32, i32, i32
  }
}

</mosaic_0001>

<bundles_post_ra>
// kernel: tpu_custom_call.1
= control target key start
LH: loop header
LB: loop body
LE: loop exit
PB: predicated region body
PF: predicated region fallthrough
CT: control target
= control target key end

     0   :  { %7 = vsyncpa [#allocation3], 0  ;;  %s269_s0 = inlined_call_operand.hbm [shape: f32[2,8,32], index: 0, kind: input, shape index: {}]   ;;  %s270_s1 = inlined_call_operand.vmem [shape: f32[1,32], index: 1, kind: input, shape index: {}]   ;;  %s271_s2 = inlined_call_operand.hbm [shape: f32[2,8,32], index: 2, kind: output, shape index: {}]  }
   0x1   :  { %8 = vsyncpa [#allocation4], 0  ;;  %s208_s9 = smov [#allocation2]   ;;  %s160_s13 = scalar_lea.hbm %s269_s0, 256 }
   0x2   :  { %s14_s10 = sshll.u32 %s208_s9, 4  ;;  %p161_p0 = scmp.ne.s32.totalorder %s269_s0, %s160_s13  ;;  %s15_s10 = int_to_ptr.vmem [resolvable:$true] %s14_s10 }
   0x3   :  { %p164_p1 = scmp.lt.u32.totalorder %s160_s13, %s269_s0 }
   0x5   :  { %p166_p2 = pnand %p164_p1, %p161_p0 }
   0x7   :  { %169 = shalt.err (!%p166_p2)
}
   0x8   :  { %s170_s18 = scalar_lea.vmem %s15_s10, 256  ;;  %p175_p4 = scmp.lt.s32.totalorder %s15_s10, %s15_s10 }
   0x9   :  { %p171_p3 = scmp.ne.s32.totalorder %s15_s10, %s170_s18  ;;  %p176_p5 = scmp.lt.s32.totalorder %s170_s18, %s170_s18 }
   0xb   :  { %p177_p6 = por %p176_p5, %p175_p4 }
   0xd   :  { %p178_p7 = pnand %p177_p6, %p171_p3 }
   0xf   :  { %181 = shalt.err (!%p178_p7)
}
  0x10   :  { %s209_s19 = smov 128   ;;  %s210_s20 = smov 8  }
  0x11   :  { %20 = dma.hbm_to_vmem [thread:$0]  %s269_s0, 256, %s15_s10, [#allocation3], %s209_s19, %s209_s19, %s210_s20  }
  0x12   :  { %204 = dma.done.wait [#allocation3], 256  }
  0x13   :  { %205 = vsyncadd [#allocation3], 4294967040  ;;  %v26_v0 = vld [vmem:[#allocation2] sm:$0xff]  ;;  %vm37_vm0 = vcmask 261120   ;;  %v27_v2 = vld [vmem:[#allocation2 + $0x8] sm:$0xff]  ;;  %v46_v7 = vlaneseq  ;;  %vm56_vm1 = vcmask 1041409  }
  0x14   :  { %v146_v1 = vld [vmem:[%s270_s1] ss:$0 sm:$0xff]  ;;  %vm59_vm2 = vcmask 58368   ;;  %v211_v17 = vmov 0   ;;  %s212_s0 = smov [#allocation5]  }
  0x15   :  { %v35_v3 = vmul.f32 %v146_v1, %v26_v0  ;;  %v36_v4 = vmul.f32 %v146_v1, %v27_v2  ;;  %v47_v8 = vand.u32 127, %v46_v7  ;;  %v49_v9 = vshrl.u32 %v46_v7, 7  ;;  %153 = vset.pattern.permute.xlu0 %v211_v17  ;;  %152 = vset.pattern.permute.xlu1 %v211_v17  ;;  %s134_s1 = sshll.u32 %s212_s0, 4  ;;  %s135_s1 = int_to_ptr.vmem [resolvable:$true] %s134_s1 }
  0x16   :  { %s182_s25 = scalar_lea.vmem %s135_s1, 256  ;;  %p187_p9 = scmp.lt.s32.totalorder %s135_s1, %s135_s1 }
  0x17   :  { %v38_v5 = vsel %vm37_vm0, %v35_v3, 0.0  ;;  %v41_v6 = vsel %vm37_vm0, %v36_v4, 0.0  ;;  %v50_v11 = vsub.s32 %v47_v8, %v49_v9  ;;  %v66_v18 = vsub.s32 0, %v49_v9  ;;  %p183_p8 = scmp.ne.s32.totalorder %s135_s1, %s182_s25  ;;  %p188_p10 = scmp.lt.s32.totalorder %s182_s25, %s182_s25 }
  0x18   :  { %39 = vadd.xlane.f32.xlu0 %v38_v5  ;;  %v70_v19 = vsub.s32 1, %v49_v9 }
  0x19   :  { %p189_p11 = por %p188_p10, %p187_p9 }
  0x1b   :  { %p190_p12 = pnand %p189_p11, %p183_p8 }
  0x1c   :  { %42 = vadd.xlane.f32.xlu0 %v41_v6 }
  0xa5   :  { %v40_v10 = vpop.xlane.xlu0 %39 }
  0xa6   :  { %v51_v13 = vrot.slane %v40_v10, %v50_v11 }
  0xa9   :  { %v43_v12 = vpop.xlane.xlu0 %42 }
  0xaa   :  { %v55_v14 = vrot.slane %v43_v12, %v50_v11 }
  0xac   :  { %v57_v15 = vsel %vm56_vm1, %v55_v14, %v51_v13 }
  0xad   :  { %v60_v16 = vsel %vm59_vm2, %v57_v15, -inf }
  0xae   :  { %61 = vmax.xlane.f32.xlu1 %v60_v16 }
 0x13b   :  { %v62_v20 = vpop.xlane.xlu1 %61 }
 0x13c   :  { %v67_v21 = vrot.slane %v62_v20, %v66_v18  ;;  %v71_v22 = vrot.slane %v62_v20, %v70_v19 }
 0x13e   :  { %v74_v23 = vsub.f32 %v40_v10, %v67_v21  ;;  %v75_v24 = vsub.f32 %v43_v12, %v71_v22 }
 0x140   :  { %v76_v25 = vmul.f32 1.442695, %v74_v23  ;;  %v78_v26 = vmul.f32 1.442695, %v75_v24 }
 0x142   :  { %154 = vpow2.f32 %v76_v25 }
 0x143   :  { %156 = vpow2.f32 %v78_v26 }
 0x14c   :  { %v155_v27 = vpop.eup %154 }
 0x14d   :  { %v157_v28 = vpop.eup %156  ;;  %83 = vperm.xlu1 %152, %v155_v27  }
 0x14e   :  { %86 = vperm.xlu0 %153, %v157_v28  }
 0x1cc   :  { %v84_v29 = vpop.permute.xlu1 %83 }
 0x1cd   :  { %v87_v30 = vpop.permute.xlu0 %86  ;;  %v91_v31 = vrot.slane %v84_v29, %v50_v11 }
 0x1ce   :  { %v95_v32 = vrot.slane %v87_v30, %v50_v11 }
 0x1d0   :  { %v96_v33 = vsel %vm56_vm1, %v95_v32, %v91_v31 }
 0x1d1   :  { %v98_v34 = vsel %vm59_vm2, %v96_v33, 0.0 }
 0x1d2   :  { %99 = vadd.xlane.f32.xlu1 %v98_v34 }
 0x25f   :  { %v100_v35 = vpop.xlane.xlu1 %99 }
 0x260   :  { %158 = vrcp.f32 %v100_v35 }
 0x26a   :  { %v159_v36 = vpop.eup %158 }
 0x26b   :  { %v106_v37 = vrot.slane %v159_v36, %v66_v18  ;;  %v110_v39 = vrot.slane %v159_v36, %v70_v19 }
 0x26d   :  { %v113_v38 = vmul.f32 %v155_v27, %v106_v37  ;;  %v114_v40 = vmul.f32 %v157_v28, %v110_v39 }
 0x26f   :  { %117 = vperm.xlu0 %153, %v113_v38  }
 0x273   :  { %122 = vperm.xlu0 %153, %v114_v40  }
 0x2ee   :  { %v118_v41 = vpop.permute.xlu0 %117 }
 0x2ef   :  { %v125_v42 = vmul.f32 %v118_v41, %v26_v0 }
 0x2f1   :  { %127 = vst.msk [vmem:[#allocation5] sm:$0xff] %vm37_vm0, %v125_v42 }
 0x2f2   :  { %v123_v43 = vpop.permute.xlu0 %122 }
 0x2f3   :  { %v126_v44 = vmul.f32 %v123_v43, %v27_v2 }
 0x2f5   :  { %128 = vst.msk [vmem:[#allocation5 + $0x8] sm:$0xff] %vm37_vm0, %v126_v44 }
 0x2f6   :  { %193 = shalt.err (!%p190_p12)
}
 0x2f7   :  { %s194_s28 = scalar_lea.hbm %s271_s2, 256 }
 0x2f8   :  { %p195_p13 = scmp.ne.s32.totalorder %s271_s2, %s194_s28  ;;  %p198_p0 = scmp.lt.u32.totalorder %s194_s28, %s271_s2 }
 0x2fa   :  { %p200_p1 = pnand %p198_p0, %p195_p13 }
 0x2fc   :  { %203 = shalt.err (!%p200_p1)
}
 0x2fd   :  { %140 = dma.vmem_to_hbm [thread:$0]  %s135_s1, 256, %s271_s2, [#allocation4], %s209_s19, %s209_s19, %s210_s20  }
 0x2fe   :  { %206 = dma.done.wait [#allocation4], 256  }
 0x2ff   :  { %207 = vsyncadd [#allocation4], 4294967040 }
 0x300   :  { %144 = vsyncpa [#allocation3], 1 }
 0x301   :  { %145 = vsyncpa [#allocation4], 1 }

</bundles_post_ra>
